<compile_context>
chip_gen: v5e
topology: v5e:2x2
jax: 0.10.0
libtpu: 0.0.40
codegen_flags: <defaults>
</compile_context>

<pallas_src>
import jax
import jax.numpy as jnp
from jax.experimental import pallas as pl
from jax.experimental.pallas import tpu as pltpu


def _round_up(n, m):
    return ((n + m - 1) // m) * m


def _sublane_multiple(dtype):
    # Minimum sublane packing: 8 for 4-byte, 16 for 2-byte, 32 for 1-byte dtypes.
    itemsize = jnp.dtype(dtype).itemsize
    return 8 * max(1, 4 // itemsize)


def _vmem_budget_bytes():
    """Byte budget for our double-buffered blocks (conservative across gens)."""
    try:
        phys = pltpu.get_tpu_info().vmem_capacity_bytes
    except Exception:
        phys = 64 << 20  # v7x physical size: the smallest of the fleet
    return min(20 << 20, phys // 3)


def _pick_hw_tile(hw, c_out, c_in_pad, itemsize, budget_bytes):
    """Lane-dense HW tile sized against a VMEM byte budget.

    Footprint per lane element = double-buffered output block (c_out rows)
    plus double-buffered input block (c_in_pad rows after sublane padding).
    """
    per_elem = 2 * (c_out + c_in_pad) * itemsize
    cap = max(128, (budget_bytes // per_elem) // 128 * 128)
    if hw <= cap:
        return hw  # single block over the full HW axis (full-dim block is legal)
    return cap     # multiple of 128; ragged tail is masked via pl.cdiv grid


def _make_channel_mask_kernel(c_in, c_pad, c_max):
    """Kernel closed over the static channel split.

    c_in : real input channels streamed from HBM.
    c_pad: c_in rounded up to the dtype's sublane packing (aligned store split).
    c_max: total output channels.
    """

    def kernel(x_ref, cm_ref, o_ref):
        # x_ref  : (1, c_in, T)  -- real input channels only (no wrapper pad)
        # cm_ref : (c_pad, 1)    -- combined mask, live rows only
        # o_ref  : (1, c_max, T)
        x = x_ref[...]
        if c_pad > c_in:
            # Zero-extend in-register so the masked/zero boundary in o_ref
            # sits on a sublane-aligned channel index.
            x = jnp.concatenate(
                [x, jnp.zeros((1, c_pad - c_in, x.shape[2]), x.dtype)], axis=1
            )
        cm = cm_ref[...]                                      # (c_pad, 1)
        o_ref[:, :c_pad, :] = (x * cm[None, :, :]).astype(o_ref.dtype)
        if c_pad < c_max:
            # Channels >= c_pad of the channel-padded output are identically 0.
            o_ref[:, c_pad:, :] = jnp.zeros(
                (1, c_max - c_pad, o_ref.shape[2]), o_ref.dtype
            )

    return kernel


def channel_mask_forward(x, alpha, masks, max_out_channels):
    """x: (B, C_in, H, W) NCHW; same forward semantics as the PyTorch module."""
    B, C_in, H, W = x.shape
    if C_in > max_out_channels:
        raise ValueError(
            f"in_channels ({C_in}) must be <= max_out_channels ({max_out_channels})"
        )
    HW = H * W
    c_max = max_out_channels
    itemsize = jnp.dtype(x.dtype).itemsize
    c_pad = min(_round_up(C_in, _sublane_multiple(x.dtype)), c_max)

    # ---- mask math hoisted out of the kernel (O(num_masks * C_max)) ----------
    weights = jax.nn.softmax(alpha.astype(jnp.float32))                   # (M,)
    binary = jnp.clip(jnp.round(masks.astype(jnp.float32)), 0.0, 1.0)     # (M, C)
    combined = jnp.sum(weights[:, None] * binary, axis=0)                 # (C,)
    # Only the live rows (< c_pad); rows [C_in, c_pad) multiply zero-extended x.
    cm = combined[:c_pad].reshape(c_pad, 1).astype(x.dtype)

    x_flat = x.reshape(B, C_in, HW)   # contiguous reshape: metadata only

    budget = _vmem_budget_bytes()
    hw_tile = _pick_hw_tile(HW, c_max, c_pad, itemsize, budget)
    n_hw = pl.cdiv(HW, hw_tile)

    # Put the larger grid axis first; both axes are embarrassingly parallel.
    if n_hw >= B:
        grid = (n_hw, B)
        x_map = lambda t, b: (b, 0, t)
        cm_map = lambda t, b: (0, 0)
        o_map = lambda t, b: (b, 0, t)
    else:
        grid = (B, n_hw)
        x_map = lambda b, t: (b, 0, t)
        cm_map = lambda b, t: (0, 0)
        o_map = lambda b, t: (b, 0, t)

    cost = pl.CostEstimate(
        flops=B * c_pad * HW,
        transcendentals=0,
        bytes_accessed=int(
            itemsize * (B * C_in * HW + B * c_max * HW)
            + 4 * (masks.size + alpha.size)
        ),
    )

    out = pl.pallas_call(
        _make_channel_mask_kernel(C_in, c_pad, c_max),
        out_shape=jax.ShapeDtypeStruct((B, c_max, HW), x.dtype),
        grid_spec=pltpu.PrefetchScalarGridSpec(
            num_scalar_prefetch=0,
            grid=grid,
            in_specs=[
                # Full-channel block (== array dim) is legal even if C_in % 8 != 0.
                pl.BlockSpec((1, C_in, hw_tile), x_map),
                pl.BlockSpec((c_pad, 1), cm_map),
            ],
            out_specs=pl.BlockSpec((1, c_max, hw_tile), o_map),
        ),
        compiler_params=pltpu.CompilerParams(
            dimension_semantics=("parallel", "parallel"),
            vmem_limit_bytes=int(budget + (8 << 20)),
        ),
        cost_estimate=cost,
    )(x_flat, cm)

    return out.reshape(B, c_max, H, W)


if __name__ == "__main__":
    in_channels = 3
    max_out_channels = 256
    num_masks = 3
    B, H, W = 2, 16, 16

    key = jax.random.PRNGKey(0)
    k_masks, k_x = jax.random.split(key)

    # Parameter init mirroring the PyTorch module's __init__:
    #   alpha = zeros(num_masks), masks = rand(num_masks, max_out_channels)
    alpha = jnp.zeros((num_masks,), dtype=jnp.float32)
    masks = jax.random.uniform(
        k_masks, (num_masks, max_out_channels), dtype=jnp.float32
    )
    x = jax.random.normal(k_x, (B, in_channels, H, W), dtype=jnp.float32)

    out = channel_mask_forward(x, alpha, masks, max_out_channels)
    out = jax.block_until_ready(out)

    # Reference check in plain JAX (same math as the PyTorch forward).
    weights = jax.nn.softmax(alpha)
    binary = jnp.clip(jnp.round(masks), 0.0, 1.0)
    combined = jnp.sum(weights[:, None] * binary, axis=0)
    x_pad = jnp.pad(
        x, ((0, 0), (0, max_out_channels - in_channels), (0, 0), (0, 0))
    )
    ref = x_pad * combined[None, :, None, None]
    assert out.shape == (B, max_out_channels, H, W)
    assert jnp.allclose(out, ref, atol=1e-6, rtol=1e-6)

    # TODO(synk): the module's custom `backward` (grad_output @ masks.view(...))
    # is not part of the forward pass and is not implemented here.

    print("KERNEL_OK")
</pallas_src>

<mosaic_0001>
module attributes {stable_mosaic.version = 11 : i64} {
  func.func @kernel(%arg0: i32, %arg1: i32, %arg2: memref<1x3x256xf32, #tpu.memory_space<vmem>>, %arg3: memref<8x1xf32, #tpu.memory_space<vmem>>, %arg4: memref<1x256x256xf32, #tpu.memory_space<vmem>>) attributes {dimension_semantics = [#tpu.dimension_semantics<parallel>, #tpu.dimension_semantics<parallel>], iteration_bounds = array<i64: 2, 1>, scalar_prefetch = 0 : i64, scratch_operands = 0 : i64, tpu.core_type = #tpu.core_type<tc>, window_params = [{transform_indices = @transform_0, window_bounds = array<i64: 1, 3, 256>}, {pipeline_mode = #tpu.pipeline_mode<synchronous>, transform_indices = @transform_1, window_bounds = array<i64: 8, 1>}, {transform_indices = @transform_2, window_bounds = array<i64: 1, 256, 256>}]} {
    %c0 = arith.constant 0 : index
    %c0_0 = arith.constant 0 : index
    %c0_1 = arith.constant 0 : index
    %0 = vector.load %arg2[%c0, %c0_0, %c0_1] : memref<1x3x256xf32, #tpu.memory_space<vmem>>, vector<1x3x256xf32>
    %cst = arith.constant 0.000000e+00 : f32
    %1 = vector.broadcast %cst : f32 to vector<1x5x256xf32>
    %2 = tpu.concatenate %0, %1 in 1 : vector<1x3x256xf32>, vector<1x5x256xf32> -> vector<1x8x256xf32>
    %c0_2 = arith.constant 0 : index
    %c0_3 = arith.constant 0 : index
    %3 = vector.load %arg3[%c0_2, %c0_3] : memref<8x1xf32, #tpu.memory_space<vmem>>, vector<8x1xf32>
    %4 = vector.shape_cast %3 : vector<8x1xf32> to vector<1x8x1xf32>
    %5 = vector.broadcast %4 : vector<1x8x1xf32> to vector<1x8x256xf32>
    %6 = arith.mulf %2, %5 : vector<1x8x256xf32>
    %c0_4 = arith.constant 0 : index
    %c0_5 = arith.constant 0 : index
    %c0_6 = arith.constant 0 : index
    %7 = vector.load %arg4[%c0_4, %c0_5, %c0_6] : memref<1x256x256xf32, #tpu.memory_space<vmem>>, vector<1x8x256xf32>
    tpu.vector_store %arg4[%c0_4, %c0_5, %c0_6], %6 {strides = array<i32>} : memref<1x256x256xf32, #tpu.memory_space<vmem>>, vector<1x8x256xf32>,
    %cst_7 = arith.constant 0.000000e+00 : f32
    %8 = vector.broadcast %cst_7 : f32 to vector<1x248x256xf32>
    %c0_8 = arith.constant 0 : index
    %c8 = arith.constant 8 : index
    %c0_9 = arith.constant 0 : index
    %9 = vector.load %arg4[%c0_8, %c8, %c0_9] : memref<1x256x256xf32, #tpu.memory_space<vmem>>, vector<1x248x256xf32>
    tpu.vector_store %arg4[%c0_8, %c8, %c0_9], %8 {strides = array<i32>} : memref<1x256x256xf32, #tpu.memory_space<vmem>>, vector<1x248x256xf32>,
    return
  }
  func.func @transform_0(%arg0: i32, %arg1: i32) -> (i32, i32, i32) {
    %c0_i32 = arith.constant 0 : i32
    %c0_i32_0 = arith.constant 0 : i32
    return %arg0, %c0_i32, %arg1 : i32, i32, i32
  }
  func.func @transform_1(%arg0: i32, %arg1: i32) -> (i32, i32) {
    %c0_i32 = arith.constant 0 : i32
    %c0_i32_0 = arith.constant 0 : i32
    %c0_i32_1 = arith.constant 0 : i32
    return %c0_i32, %c0_i32_0 : i32, i32
  }
  func.func @transform_2(%arg0: i32, %arg1: i32) -> (i32, i32, i32) {
    %c0_i32 = arith.constant 0 : i32
    %c0_i32_0 = arith.constant 0 : i32
    return %arg0, %c0_i32, %arg1 : i32, i32, i32
  }
}

</mosaic_0001>

<bundles_post_ra>
// kernel: tpu_custom_call.1
= control target key start
LH: loop header
LB: loop body
LE: loop exit
PB: predicated region body
PF: predicated region fallthrough
CT: control target
= control target key end

     0   :  { %7 = vsyncpa [#allocation3], 0  ;;  %s759_s0 = inlined_call_operand.vmem [shape: f32[2,3,256], index: 0, kind: input, shape index: {}]   ;;  %s760_s1 = inlined_call_operand.vmem [shape: f32[8,1], index: 1, kind: input, shape index: {}]   ;;  %s761_s2 = inlined_call_operand.hbm [shape: f32[2,256,256], index: 2, kind: output, shape index: {}]  }
   0x1   :  { %9 = vsyncpa [#allocation3 + $0x1], 0  ;;  %s526_s9 = smov 0   ;;  %s528_s10 = smov 0  }
   0x2   :  { %s530_s11 = smov 0   ;;  %s532_s12 = smov 0  }
   0x3   :  { %s534_s13 = smov 0   ;;  %s536_s14 = smov 0  }
   0x4 LB: > { %s352_s15 = sadd.s32 4294967295, %s505_s14   ;;  %s353_s16 = sadd.s32 4294967294, %s505_s14   ;;  %s505_s14 = sphi %s536_s14, %s15_s14   ;;  %s501_s13 = sphi %s534_s13, %s768_s13   ;;  %s497_s12 = sphi %s532_s12, %s767_s12   ;;  %s493_s11 = sphi %s530_s11, %s766_s11   ;;  %s489_s10 = sphi %s528_s10, %s765_s10   ;;  %s485_s9 = sphi %s526_s9, %s764_s9  }
   0x5   : > { %s27_s17 = sadd.s32 1, %s501_s13  ;;  %s85_s18 = sadd.s32 1, %s493_s11 }
   0x6   : > { %p29_p0 = scmp.ge.s32.totalorder %s27_s17, 2  ;;  %p95_p1 = scmp.ne.s32.totalorder %s493_s11, %s489_s10 }
   0x7   : > { %p96_p2 = scmp.eq.s32.totalorder %s352_s15, 1  ;;  %p101_p3 = scmp.ne.s32.totalorder %s489_s10, %s485_s9 }
   0x8   : > { %s770_s17 = smov (%p29_p0, %s27_s17), 0  ;;  %p102_p5 = scmp.eq.s32.totalorder %s353_s16, 1 }
   0x9   : > { %p566_p4 = por %p96_p2, %p95_p1  ;;  %s80_s20 = ssub.s32 %s501_s13, %s770_s17 }
   0xa   : > { %p356_p6 = scmp.ge.s32.totalorder %s505_s14, 1  ;;  %p83_p7 = scmp.eq.s32.totalorder %s80_s20, 0 }
   0xb   : > { %p573_p8 = por %p102_p5, %p101_p3  ;;  %p136_p9 = scmp.lt.s32.totalorder %s505_s14, 3 }
   0xc   : > { %s579_s22 = scalar_select %p83_p7, %s493_s11, %s85_s18  }
   0xd   : > { %p137_p10 = pnand %p356_p6, %p136_p9 }
   0xe   : > { %p163_p11 = scmp.lt.s32.totalorder (!%p137_p10), %s497_s12, 1  ;;  %s159_s30 = sand.u32 (!%p137_p10), 1, %s489_s10  }
   0xf   : > { %140 = sbr.rel (%p137_p10) target bundleno = 144 (0x90), region = 28  ;;  %s357_s3 = sshll.u32 (!%p137_p10), %s159_s30, 9 }
  0x10   : > { %s592_s4 = scalar_lea.vmem (!%p137_p10), [#allocation2], %s357_s3  ;;  %s366_s5 = sshll.u32 (!%p137_p10), %s497_s12, 9 }
  0x11   : > { %s269_s8 = scalar_lea.hbm (!%p137_p10), %s761_s2, %s366_s5  ;;  %s256_s16 = scalar_lea.sflag (!%p137_p10), [#allocation3], %s159_s30 }
  0x12   : > { %s272_s15 = sshll.u32 (!%p137_p10), %s269_s8, 4  ;;  %s273_s15 = int_to_ptr.hbm [resolvable:$true] %s272_s15 }
  0x13   : > { %s441_s18 = sshra.s32 (!%p137_p10), %s273_s15, 4  ;;  %s442_s18 = int_to_ptr.hbm [resolvable:$true] %s441_s18 }
  0x14   : > { %v183_v0 = vld [vmem:[%s760_s1] sm:$0xff]  ;;  %v507_v1 = vmov 0   ;;  %s164_s25 = scalar_select %p163_p11, %s497_s12, 1  ;;  %v508_v3 = vmov 0.0   ;;  %vm180_vm0 = vcmask 1042432  }
  0x15   : > { %426 = vset.pattern.permute.xlu0 %v507_v1  ;;  %193 = vst [vmem:[%s592_s4 + $0x10] sm:$0xff] %v508_v3  ;;  %s270_s12 = sshll.u32 %s592_s4, 4  ;;  %s443_s20 = scalar_lea.hbm %s442_s18, 512  ;;  %s271_s12 = int_to_ptr.vmem [resolvable:$true] %s270_s12 }
  0x16   : > { %186 = vperm.xlu0 %426, %v183_v0   ;;  %s365_s26 = sshll.u32 %s164_s25, 3  ;;  %194 = vst [vmem:[%s592_s4 + $0x18] sm:$0xff] %v508_v3  ;;  %p444_p12 = scmp.ne.s32.totalorder %s442_s18, %s443_s20 }
  0x17   : > { %s170_s29 = scalar_lea.vmem %s759_s0, %s365_s26  ;;  %195 = vst [vmem:[%s592_s4 + $0x20] sm:$0xff] %v508_v3  ;;  %s447_s25 = scalar_lea.hbm %s761_s2, 1024 }
  0x18   : > { %v173_v2 = vld [vmem:[%s170_s29] sm:$0x77]  ;;  %196 = vst [vmem:[%s592_s4 + $0x28] sm:$0xff] %v508_v3  ;;  %p445_p13 = pnand %p444_p12, %p566_p4  ;;  %p448_p1 = scmp.lt.s32.totalorder %s442_s18, %s761_s2 }
  0x19   : > { %175 = vst [vmem:[#allocation1] ss:$2 sm:$0xff] %v173_v2  ;;  %p449_p2 = scmp.lt.s32.totalorder %s447_s25, %s443_s20 }
  0x1a   : > { %197 = vst [vmem:[%s592_s4 + $0x30] sm:$0xff] %v508_v3  ;;  %p446_p0 = pneg %p445_p13 }
  0x1b   : > { %198 = vst [vmem:[%s592_s4 + $0x38] sm:$0xff] %v508_v3  ;;  %p450_p3 = por %p449_p2, %p448_p1 }
  0x1c   : > { %199 = vst [vmem:[%s592_s4 + $0x40] sm:$0xff] %v508_v3 }
  0x1d   : > { %200 = vst [vmem:[%s592_s4 + $0x48] sm:$0xff] %v508_v3  ;;  %p451_p5 = pnand %p450_p3, %p446_p0 }
  0x1e   : > { %201 = vst [vmem:[%s592_s4 + $0x50] sm:$0xff] %v508_v3 }
  0x1f   : > { %202 = vst [vmem:[%s592_s4 + $0x58] sm:$0xff] %v508_v3 }
  0x20   : > { %203 = vst [vmem:[%s592_s4 + $0x60] sm:$0xff] %v508_v3  ;;  %v176_v4 = vld.sshfl [vmem:[#allocation1] sm:$0xff pattern:$0x75316420] }
  0x21   : > { %204 = vst [vmem:[%s592_s4 + $0x68] sm:$0xff] %v508_v3  ;;  %v177_v5 = vld.sshfl [vmem:[#allocation1 + $0x8] sm:$0xff pattern:$0x75316420]  ;;  %v181_v6 = vsel %vm180_vm0, %v176_v4, 0.0 }
  0x22   : > { %205 = vst [vmem:[%s592_s4 + $0x70] sm:$0xff] %v508_v3  ;;  %v182_v7 = vsel %vm180_vm0, %v177_v5, 0.0 }
  0x23   : > { %206 = vst [vmem:[%s592_s4 + $0x78] sm:$0xff] %v508_v3 }
  0x24   : > { %207 = vst [vmem:[%s592_s4 + $0x80] sm:$0xff] %v508_v3 }
  0x25   : > { %208 = vst [vmem:[%s592_s4 + $0x88] sm:$0xff] %v508_v3 }
  0x26   : > { %209 = vst [vmem:[%s592_s4 + $0x90] sm:$0xff] %v508_v3 }
  0x27   : > { %210 = vst [vmem:[%s592_s4 + $0x98] sm:$0xff] %v508_v3 }
  0x28   : > { %211 = vst [vmem:[%s592_s4 + $0xa0] sm:$0xff] %v508_v3 }
  0x29   : > { %212 = vst [vmem:[%s592_s4 + $0xa8] sm:$0xff] %v508_v3 }
  0x2a   : > { %213 = vst [vmem:[%s592_s4 + $0xb0] sm:$0xff] %v508_v3 }
  0x2b   : > { %214 = vst [vmem:[%s592_s4 + $0xb8] sm:$0xff] %v508_v3 }
  0x2c   : > { %215 = vst [vmem:[%s592_s4 + $0xc0] sm:$0xff] %v508_v3 }
  0x2d   : > { %216 = vst [vmem:[%s592_s4 + $0xc8] sm:$0xff] %v508_v3 }
  0x2e   : > { %217 = vst [vmem:[%s592_s4 + $0xd0] sm:$0xff] %v508_v3 }
  0x2f   : > { %218 = vst [vmem:[%s592_s4 + $0xd8] sm:$0xff] %v508_v3 }
  0x30   : > { %219 = vst [vmem:[%s592_s4 + $0xe0] sm:$0xff] %v508_v3 }
  0x31   : > { %220 = vst [vmem:[%s592_s4 + $0xe8] sm:$0xff] %v508_v3 }
  0x32   : > { %221 = vst [vmem:[%s592_s4 + $0xf0] sm:$0xff] %v508_v3 }
  0x33   : > { %222 = vst [vmem:[%s592_s4 + $0xf8] sm:$0xff] %v508_v3 }
  0x34   : > { %223 = vst [vmem:[%s592_s4 + $0x100] sm:$0xff] %v508_v3 }
  0x35   : > { %224 = vst [vmem:[%s592_s4 + $0x108] sm:$0xff] %v508_v3 }
  0x36   : > { %225 = vst [vmem:[%s592_s4 + $0x110] sm:$0xff] %v508_v3 }
  0x37   : > { %226 = vst [vmem:[%s592_s4 + $0x118] sm:$0xff] %v508_v3 }
  0x38   : > { %227 = vst [vmem:[%s592_s4 + $0x120] sm:$0xff] %v508_v3 }
  0x39   : > { %228 = vst [vmem:[%s592_s4 + $0x128] sm:$0xff] %v508_v3 }
  0x3a   : > { %229 = vst [vmem:[%s592_s4 + $0x130] sm:$0xff] %v508_v3 }
  0x3b   : > { %230 = vst [vmem:[%s592_s4 + $0x138] sm:$0xff] %v508_v3 }
  0x3c   : > { %231 = vst [vmem:[%s592_s4 + $0x140] sm:$0xff] %v508_v3 }
  0x3d   : > { %232 = vst [vmem:[%s592_s4 + $0x148] sm:$0xff] %v508_v3 }
  0x3e   : > { %233 = vst [vmem:[%s592_s4 + $0x150] sm:$0xff] %v508_v3 }
  0x3f   : > { %234 = vst [vmem:[%s592_s4 + $0x158] sm:$0xff] %v508_v3 }
  0x40   : > { %235 = vst [vmem:[%s592_s4 + $0x160] sm:$0xff] %v508_v3 }
  0x41   : > { %236 = vst [vmem:[%s592_s4 + $0x168] sm:$0xff] %v508_v3 }
  0x42   : > { %237 = vst [vmem:[%s592_s4 + $0x170] sm:$0xff] %v508_v3 }
  0x43   : > { %238 = vst [vmem:[%s592_s4 + $0x178] sm:$0xff] %v508_v3 }
  0x44   : > { %239 = vst [vmem:[%s592_s4 + $0x180] sm:$0xff] %v508_v3 }
  0x45   : > { %240 = vst [vmem:[%s592_s4 + $0x188] sm:$0xff] %v508_v3 }
  0x46   : > { %241 = vst [vmem:[%s592_s4 + $0x190] sm:$0xff] %v508_v3 }
  0x47   : > { %242 = vst [vmem:[%s592_s4 + $0x198] sm:$0xff] %v508_v3 }
  0x48   : > { %243 = vst [vmem:[%s592_s4 + $0x1a0] sm:$0xff] %v508_v3 }
  0x49   : > { %244 = vst [vmem:[%s592_s4 + $0x1a8] sm:$0xff] %v508_v3 }
  0x4a   : > { %245 = vst [vmem:[%s592_s4 + $0x1b0] sm:$0xff] %v508_v3 }
  0x4b   : > { %246 = vst [vmem:[%s592_s4 + $0x1b8] sm:$0xff] %v508_v3 }
  0x4c   : > { %247 = vst [vmem:[%s592_s4 + $0x1c0] sm:$0xff] %v508_v3 }
  0x4d   : > { %248 = vst [vmem:[%s592_s4 + $0x1c8] sm:$0xff] %v508_v3 }
  0x4e   : > { %249 = vst [vmem:[%s592_s4 + $0x1d0] sm:$0xff] %v508_v3 }
  0x4f   : > { %250 = vst [vmem:[%s592_s4 + $0x1d8] sm:$0xff] %v508_v3 }
  0x50   : > { %251 = vst [vmem:[%s592_s4 + $0x1e0] sm:$0xff] %v508_v3 }
  0x51   : > { %252 = vst [vmem:[%s592_s4 + $0x1e8] sm:$0xff] %v508_v3 }
  0x52   : > { %253 = vst [vmem:[%s592_s4 + $0x1f0] sm:$0xff] %v508_v3 }
  0x53   : > { %254 = vst [vmem:[%s592_s4 + $0x1f8] sm:$0xff] %v508_v3 }
  0x88   : > { %v187_v8 = vpop.permute.xlu0 %186 }
  0x89   : > { %v189_v9 = vmul.f32 %v187_v8, %v181_v6  ;;  %v190_v10 = vmul.f32 %v187_v8, %v182_v7 }
  0x8b   : > { %191 = vst [vmem:[%s592_s4] sm:$0xff] %v189_v9 }
  0x8c   : > { %192 = vst [vmem:[%s592_s4 + $0x8] sm:$0xff] %v190_v10 }
  0x8d   : > { %454 = shalt.err (!%p451_p5)
}
  0x8e   : > { %s509_s28 = smov 256   ;;  %s510_s29 = smov 16  }
  0x8f   : > { %367 = dma.vmem_to_hbm [thread:$0]  (%p566_p4), %s271_s12, 8192, %s273_s15, %s256_s16, %s509_s28, %s509_s28, %s510_s29  }
  0x90 PF: > { %p373_p6 = scmp.ge.s32.totalorder %s505_s14, 2  ;;  %s287_s30 = sand.u32 1, %s485_s9  }
  0x91   : > { %s288_s3 = scalar_lea.sflag [#allocation3], %s287_s30 }
  0x92   : > { %p370_p7 = pnand %p373_p6, %p573_p8 }
  0x94   : > { %p371_p9 = pneg %p370_p7 }
  0x96   : > { %480 = dma.done.wait (%p371_p9), %s288_s3, 8192  }
  0x97   : > { %482 = vsyncadd (%p371_p9), %s288_s3, 4294959104  ;;  %s15_s14 = sadd.s32 1, %s505_s14   ;;  %s764_s9 = smov %s489_s10 }
  0x98   : > { %p12_p10 = scmp.ge.s32.totalorder %s15_s14, 4   ;;  %s765_s10 = smov %s493_s11 }
  0x99   : > { %s766_s11 = smov %s579_s22  ;;  %s767_s12 = smov %s501_s13 }
  0x9a   : > { %s768_s13 = smov %s770_s17  ;;  %14 = sbr.rel (!%p12_p10) target bundleno = 4 (0x4), region = 63 }
  0x9f   :  { %294 = vsyncpa [#allocation3], 1 }
  0xa0   :  { %296 = vsyncpa [#allocation3 + $0x1], 1 }

</bundles_post_ra>
